<compile_context>
chip_gen: v6e
topology: v6e:2x2x1
jax: 0.10.0
libtpu: 0.0.40
codegen_flags: <defaults>
</compile_context>

<pallas_src>
import functools

import jax
import jax.numpy as jnp
import numpy as np
from jax.experimental import pallas as pl
from jax.experimental.pallas import tpu as pltpu


def _text_attn_cnn_kernel(xcol_ref, wc_ref, pslab_ref, out_ref, *,
                          context_sizes, batch, seq_len, l_out_max, filter_num, hidden):
    """Fused TextAttnCNN forward; single invocation, everything resident in VMEM.

    xcol_ref : (n_branch, B*L_out_max, K_max)  zero-padded im2col windows (channel-last)
    wc_ref   : (n_branch, K_max, F)            conv weights, taps folded into contraction dim
    pslab_ref: (n_branch, F+3, F)              row 0: conv bias; rows 1..F: wl (width H);
                                               row F+1: bl; row F+2: attention vector W (row)
    out_ref  : (B, n_branch*F)                 written with ONE full-array store
    """
    F, H, B, Lm = filter_num, hidden, batch, l_out_max

    pooled_parts = []
    for i, ks in enumerate(context_sizes):          # static unroll over branches
        l_out = seq_len - ks + 1

        xc = xcol_ref[i]                            # (B*Lm, K_max)
        wc = wc_ref[i]                              # (K_max, F)
        ps = pslab_ref[i]                           # (F+3, F)
        bc = ps[0:1, :]                             # (1, F)
        wl = ps[1:1 + F, :H]                        # (F, H)
        bl = ps[1 + F:2 + F, :H]                    # (1, H)
        wa = ps[2 + F:3 + F, :H]                    # (1, H)  attention vector as a row

        # Conv1d + ReLU: ONE MXU matmul for all batches (taps folded into K).
        conv_flat = jnp.maximum(
            jnp.dot(xc, wc, preferred_element_type=jnp.float32) + bc, 0.0)       # (B*Lm, F)

        # SimpleAttention hidden: ONE (B*Lm, F)x(F, H) matmul + ReLU.
        h = jnp.maximum(
            jnp.dot(conv_flat, wl, preferred_element_type=jnp.float32) + bl, 0.0)  # (B*Lm, H)

        # score = H @ W done as multiply + lane reduce (avoids an N=1 MXU matmul).
        score_flat = jnp.sum(h * wa, axis=-1, keepdims=True)                      # (B*Lm, 1)

        conv = conv_flat.reshape(B, Lm, F)
        score = score_flat.reshape(B, Lm, 1)

        if l_out < Lm:  # exact static mask of zero-padded rows for this branch
            l_idx = jax.lax.broadcasted_iota(jnp.int32, (B, Lm, 1), 1)
            score = jnp.where(l_idx < l_out, score, -jnp.inf)

        # Softmax over the sequence (torch dim=1), normalization folded into pooling.
        m = jnp.max(score, axis=1, keepdims=True)        # (B, 1, 1)
        p = jnp.exp(score - m)                           # padded rows -> exp(-inf) = 0
        denom = jnp.sum(p, axis=1)                       # (B, 1)
        pooled = jnp.sum(conv * p, axis=1) / denom       # (B, F)
        pooled_parts.append(pooled)

    # One full-array store of the concatenated branch outputs.
    out_ref[...] = jnp.concatenate(pooled_parts, axis=-1)


@functools.partial(jax.jit, static_argnames=("context_sizes",))
def text_attn_cnn(x_bcl, params, context_sizes):
    """x_bcl: (B, feaSize, seqLen) NCW like PyTorch; returns (B, filterNum*len(context_sizes))."""
    x_blc = jnp.transpose(x_bcl, (0, 2, 1)).astype(jnp.float32)   # channel-last (B, L, C)
    B, L, C = x_blc.shape
    F = params[0][0].shape[-1]
    H = params[0][2].shape[-1]
    assert H <= F, "param-slab packing assumes hidden <= filterNum"
    n = len(context_sizes)
    Lm = L - min(context_sizes) + 1            # largest L_out across branches
    Km = max(context_sizes) * C                # largest folded contraction dim
    total = n * F

    xcols, wcs, pss = [], [], []
    for (wc, bc, wl, bl, wa), ks in zip(params, context_sizes):
        l_out = L - ks + 1
        # im2col / unfold: windows concatenated on the channel (lane) axis -> (B, l_out, ks*C)
        xcol = jnp.concatenate([x_blc[:, k:k + l_out, :] for k in range(ks)], axis=-1)
        xcol = jnp.pad(xcol, ((0, 0), (0, Lm - l_out), (0, Km - ks * C)))
        xcols.append(xcol.reshape(B * Lm, Km))
        # (tap, in, out) -> (tap*in, out); padded rows meet padded xcol lanes (exact zeros).
        wcs.append(jnp.pad(wc.reshape(ks * C, F), ((0, Km - ks * C), (0, 0))))
        # Small params packed into one (F+3, F) slab per branch.
        ps = jnp.zeros((F + 3, F), jnp.float32)
        ps = ps.at[0, :].set(bc[0])
        ps = ps.at[1:1 + F, :H].set(wl)
        ps = ps.at[1 + F, :H].set(bl[0])
        ps = ps.at[2 + F, :H].set(wa[:, 0])
        pss.append(ps)

    xcol_slab = jnp.stack(xcols)               # (n, B*Lm, Km)
    wc_slab = jnp.stack(wcs)                   # (n, Km, F)
    pslab = jnp.stack(pss)                     # (n, F+3, F)

    kern = functools.partial(
        _text_attn_cnn_kernel,
        context_sizes=tuple(context_sizes), batch=B, seq_len=L,
        l_out_max=Lm, filter_num=F, hidden=H)

    return pl.pallas_call(
        kern,
        out_shape=jax.ShapeDtypeStruct((B, total), jnp.float32),
        in_specs=[pl.BlockSpec(memory_space=pltpu.MemorySpace.VMEM)] * 3,
        out_specs=pl.BlockSpec(memory_space=pltpu.MemorySpace.VMEM),
    )(xcol_slab, wc_slab, pslab)


def text_attn_cnn_reference(x_bcl, params, context_sizes):
    """Pure-JAX reference mirroring the PyTorch forward semantics."""
    hi = jax.lax.Precision.HIGHEST
    x_blc = jnp.transpose(x_bcl, (0, 2, 1))
    outs = []
    for (wc, bc, wl, bl, wa), ks in zip(params, context_sizes):
        L = x_blc.shape[1]
        l_out = L - ks + 1
        acc = jnp.zeros((x_blc.shape[0], l_out, wc.shape[-1]), jnp.float32)
        for k in range(ks):
            acc = acc + jnp.einsum('blc,cf->blf', x_blc[:, k:k + l_out, :], wc[k], precision=hi)
        conv = jax.nn.relu(acc + bc)                                              # (B, L_out, F)
        h = jax.nn.relu(jnp.einsum('blf,fh->blh', conv, wl, precision=hi) + bl)   # (B, L_out, H)
        score = jnp.einsum('blh,ho->blo', h, wa, precision=hi)                    # (B, L_out, 1)
        alpha = jax.nn.softmax(score, axis=1)
        outs.append(jnp.einsum('blf,blo->bf', conv, alpha, precision=hi))
    return jnp.concatenate(outs, axis=1)


def init_params(key, fea_size, context_sizes, filter_num):
    """Deterministic synthetic parameters (shapes from the module __init__)."""
    hidden = filter_num // 4
    params = []
    for ks in context_sizes:
        key, k1, k2, k3, k4, k5 = jax.random.split(key, 6)
        wc = jax.random.normal(k1, (ks, fea_size, filter_num), jnp.float32) * 0.1
        bc = jax.random.normal(k2, (1, filter_num), jnp.float32) * 0.1
        wl = jax.random.normal(k3, (filter_num, hidden), jnp.float32) * 0.1
        bl = jax.random.normal(k4, (1, hidden), jnp.float32) * 0.1
        wa = jax.random.normal(k5, (hidden, 1), jnp.float32)
        params.append((wc, bc, wl, bl, wa))
    return params


if __name__ == "__main__":
    # Small shapes consistent with the module: feaSize=32, seqMaxLen=16,
    # contextSizeList=[1, 3, 5], filterNum=16, batch=2.
    B, fea_size, seq_len = 2, 32, 16
    context_sizes = (1, 3, 5)
    filter_num = 16

    key = jax.random.PRNGKey(0)
    key, kx = jax.random.split(key)
    x = jax.random.normal(kx, (B, fea_size, seq_len), jnp.float32)  # NCW like PyTorch Conv1d
    params = init_params(key, fea_size, context_sizes, filter_num)

    out = jax.block_until_ready(text_attn_cnn(x, params, context_sizes))
    ref = jax.block_until_ready(text_attn_cnn_reference(x, params, context_sizes))

    assert out.shape == (B, filter_num * len(context_sizes)), out.shape
    np.testing.assert_allclose(np.asarray(out), np.asarray(ref), rtol=1e-4, atol=1e-4)
    print("KERNEL_OK")
</pallas_src>

<mosaic_0001>
module attributes {stable_mosaic.version = 11 : i64} {
  func.func @_text_attn_cnn_kernel(%arg0: memref<3x32x160xf32, #tpu.memory_space<vmem>>, %arg1: memref<3x160x16xf32, #tpu.memory_space<vmem>>, %arg2: memref<3x19x16xf32, #tpu.memory_space<vmem>>, %arg3: memref<2x48xf32, #tpu.memory_space<vmem>>) attributes {dimension_semantics = [], scalar_prefetch = 0 : i64, scratch_operands = 0 : i64, tpu.core_type = #tpu.core_type<tc>} {
    %c0 = arith.constant 0 : index
    %c0_0 = arith.constant 0 : index
    %c0_1 = arith.constant 0 : index
    %0 = vector.load %arg0[%c0, %c0_0, %c0_1] : memref<3x32x160xf32, #tpu.memory_space<vmem>>, vector<1x32x160xf32>
    %1 = vector.shape_cast %0 : vector<1x32x160xf32> to vector<32x160xf32>
    %c0_2 = arith.constant 0 : index
    %c0_3 = arith.constant 0 : index
    %c0_4 = arith.constant 0 : index
    %2 = vector.load %arg1[%c0_2, %c0_3, %c0_4] : memref<3x160x16xf32, #tpu.memory_space<vmem>>, vector<1x160x16xf32>
    %3 = vector.shape_cast %2 : vector<1x160x16xf32> to vector<160x16xf32>
    %c0_5 = arith.constant 0 : index
    %c0_6 = arith.constant 0 : index
    %c0_7 = arith.constant 0 : index
    %4 = vector.load %arg2[%c0_5, %c0_6, %c0_7] : memref<3x19x16xf32, #tpu.memory_space<vmem>>, vector<1x19x16xf32>
    %5 = vector.shape_cast %4 : vector<1x19x16xf32> to vector<19x16xf32>
    %6 = vector.extract_strided_slice %5 {offsets = [0, 0], sizes = [1, 16], strides = [1, 1]} : vector<19x16xf32> to vector<1x16xf32>
    %7 = vector.extract_strided_slice %5 {offsets = [1, 0], sizes = [16, 4], strides = [1, 1]} : vector<19x16xf32> to vector<16x4xf32>
    %8 = vector.extract_strided_slice %5 {offsets = [17, 0], sizes = [1, 4], strides = [1, 1]} : vector<19x16xf32> to vector<1x4xf32>
    %9 = vector.extract_strided_slice %5 {offsets = [18, 0], sizes = [1, 4], strides = [1, 1]} : vector<19x16xf32> to vector<1x4xf32>
    %cst = arith.constant dense<0.000000e+00> : vector<32x16xf32>
    %10 = tpu.matmul %1, %3, %cst {dimension_numbers = #tpu.dot_dimension_numbers<[1], [0], [0], [1], [0, 0, 1, 1], [], []>} : vector<32x160xf32>, vector<160x16xf32>, vector<32x16xf32> -> vector<32x16xf32>
    %11 = vector.broadcast %6 : vector<1x16xf32> to vector<32x16xf32>
    %12 = arith.addf %10, %11 : vector<32x16xf32>
    %cst_8 = arith.constant 0.000000e+00 : f32
    %13 = vector.broadcast %cst_8 : f32 to vector<32x16xf32>
    %14 = arith.maximumf %12, %13 : vector<32x16xf32>
    %cst_9 = arith.constant dense<0.000000e+00> : vector<32x4xf32>
    %15 = tpu.matmul %14, %7, %cst_9 {dimension_numbers = #tpu.dot_dimension_numbers<[1], [0], [0], [1], [0, 0, 1, 1], [], []>} : vector<32x16xf32>, vector<16x4xf32>, vector<32x4xf32> -> vector<32x4xf32>
    %16 = vector.broadcast %8 : vector<1x4xf32> to vector<32x4xf32>
    %17 = arith.addf %15, %16 : vector<32x4xf32>
    %cst_10 = arith.constant 0.000000e+00 : f32
    %18 = vector.broadcast %cst_10 : f32 to vector<32x4xf32>
    %19 = arith.maximumf %17, %18 : vector<32x4xf32>
    %20 = vector.broadcast %9 : vector<1x4xf32> to vector<32x4xf32>
    %21 = arith.mulf %19, %20 : vector<32x4xf32>
    %cst_11 = arith.constant dense<0.000000e+00> : vector<32xf32>
    %22 = vector.multi_reduction <add>, %21, %cst_11 [1] : vector<32x4xf32> to vector<32xf32>
    %23 = vector.shape_cast %22 : vector<32xf32> to vector<32x1xf32>
    %24 = vector.shape_cast %14 : vector<32x16xf32> to vector<2x16x16xf32>
    %25 = vector.shape_cast %23 : vector<32x1xf32> to vector<2x16x1xf32>
    %cst_12 = arith.constant dense<0xFF800000> : vector<2x1xf32>
    %26 = vector.multi_reduction <maximumf>, %25, %cst_12 [1] : vector<2x16x1xf32> to vector<2x1xf32>
    %27 = vector.shape_cast %26 : vector<2x1xf32> to vector<2x1x1xf32>
    %28 = vector.broadcast %27 : vector<2x1x1xf32> to vector<2x16x1xf32>
    %29 = arith.subf %25, %28 : vector<2x16x1xf32>
    %30 = math.exp %29 : vector<2x16x1xf32>
    %cst_13 = arith.constant dense<0.000000e+00> : vector<2x1xf32>
    %31 = vector.multi_reduction <add>, %30, %cst_13 [1] : vector<2x16x1xf32> to vector<2x1xf32>
    %32 = vector.broadcast %30 : vector<2x16x1xf32> to vector<2x16x16xf32>
    %33 = arith.mulf %24, %32 : vector<2x16x16xf32>
    %cst_14 = arith.constant dense<0.000000e+00> : vector<2x16xf32>
    %34 = vector.multi_reduction <add>, %33, %cst_14 [1] : vector<2x16x16xf32> to vector<2x16xf32>
    %35 = vector.broadcast %31 : vector<2x1xf32> to vector<2x16xf32>
    %36 = arith.divf %34, %35 : vector<2x16xf32>
    %c1 = arith.constant 1 : index
    %c0_15 = arith.constant 0 : index
    %c0_16 = arith.constant 0 : index
    %37 = vector.load %arg0[%c1, %c0_15, %c0_16] : memref<3x32x160xf32, #tpu.memory_space<vmem>>, vector<1x32x160xf32>
    %38 = vector.shape_cast %37 : vector<1x32x160xf32> to vector<32x160xf32>
    %c1_17 = arith.constant 1 : index
    %c0_18 = arith.constant 0 : index
    %c0_19 = arith.constant 0 : index
    %39 = vector.load %arg1[%c1_17, %c0_18, %c0_19] : memref<3x160x16xf32, #tpu.memory_space<vmem>>, vector<1x160x16xf32>
    %40 = vector.shape_cast %39 : vector<1x160x16xf32> to vector<160x16xf32>
    %c1_20 = arith.constant 1 : index
    %c0_21 = arith.constant 0 : index
    %c0_22 = arith.constant 0 : index
    %41 = vector.load %arg2[%c1_20, %c0_21, %c0_22] : memref<3x19x16xf32, #tpu.memory_space<vmem>>, vector<1x19x16xf32>
    %42 = vector.shape_cast %41 : vector<1x19x16xf32> to vector<19x16xf32>
    %43 = vector.extract_strided_slice %42 {offsets = [0, 0], sizes = [1, 16], strides = [1, 1]} : vector<19x16xf32> to vector<1x16xf32>
    %44 = vector.extract_strided_slice %42 {offsets = [1, 0], sizes = [16, 4], strides = [1, 1]} : vector<19x16xf32> to vector<16x4xf32>
    %45 = vector.extract_strided_slice %42 {offsets = [17, 0], sizes = [1, 4], strides = [1, 1]} : vector<19x16xf32> to vector<1x4xf32>
    %46 = vector.extract_strided_slice %42 {offsets = [18, 0], sizes = [1, 4], strides = [1, 1]} : vector<19x16xf32> to vector<1x4xf32>
    %cst_23 = arith.constant dense<0.000000e+00> : vector<32x16xf32>
    %47 = tpu.matmul %38, %40, %cst_23 {dimension_numbers = #tpu.dot_dimension_numbers<[1], [0], [0], [1], [0, 0, 1, 1], [], []>} : vector<32x160xf32>, vector<160x16xf32>, vector<32x16xf32> -> vector<32x16xf32>
    %48 = vector.broadcast %43 : vector<1x16xf32> to vector<32x16xf32>
    %49 = arith.addf %47, %48 : vector<32x16xf32>
    %cst_24 = arith.constant 0.000000e+00 : f32
    %50 = vector.broadcast %cst_24 : f32 to vector<32x16xf32>
    %51 = arith.maximumf %49, %50 : vector<32x16xf32>
    %cst_25 = arith.constant dense<0.000000e+00> : vector<32x4xf32>
    %52 = tpu.matmul %51, %44, %cst_25 {dimension_numbers = #tpu.dot_dimension_numbers<[1], [0], [0], [1], [0, 0, 1, 1], [], []>} : vector<32x16xf32>, vector<16x4xf32>, vector<32x4xf32> -> vector<32x4xf32>
    %53 = vector.broadcast %45 : vector<1x4xf32> to vector<32x4xf32>
    %54 = arith.addf %52, %53 : vector<32x4xf32>
    %cst_26 = arith.constant 0.000000e+00 : f32
    %55 = vector.broadcast %cst_26 : f32 to vector<32x4xf32>
    %56 = arith.maximumf %54, %55 : vector<32x4xf32>
    %57 = vector.broadcast %46 : vector<1x4xf32> to vector<32x4xf32>
    %58 = arith.mulf %56, %57 : vector<32x4xf32>
    %cst_27 = arith.constant dense<0.000000e+00> : vector<32xf32>
    %59 = vector.multi_reduction <add>, %58, %cst_27 [1] : vector<32x4xf32> to vector<32xf32>
    %60 = vector.shape_cast %59 : vector<32xf32> to vector<32x1xf32>
    %61 = vector.shape_cast %51 : vector<32x16xf32> to vector<2x16x16xf32>
    %62 = vector.shape_cast %60 : vector<32x1xf32> to vector<2x16x1xf32>
    %63 = tpu.iota {dimensions = array<i32: 1>} : vector<2x16x1xi32>
    %c14_i32 = arith.constant 14 : i32
    %64 = vector.broadcast %c14_i32 : i32 to vector<2x16x1xi32>
    %65 = arith.cmpi slt, %63, %64 : vector<2x16x1xi32>
    %cst_28 = arith.constant 0xFF800000 : f32
    %66 = vector.broadcast %cst_28 : f32 to vector<2x16x1xf32>
    %67 = arith.select %65, %62, %66 : vector<2x16x1xi1>, vector<2x16x1xf32>
    %cst_29 = arith.constant dense<0xFF800000> : vector<2x1xf32>
    %68 = vector.multi_reduction <maximumf>, %67, %cst_29 [1] : vector<2x16x1xf32> to vector<2x1xf32>
    %69 = vector.shape_cast %68 : vector<2x1xf32> to vector<2x1x1xf32>
    %70 = vector.broadcast %69 : vector<2x1x1xf32> to vector<2x16x1xf32>
    %71 = arith.subf %67, %70 : vector<2x16x1xf32>
    %72 = math.exp %71 : vector<2x16x1xf32>
    %cst_30 = arith.constant dense<0.000000e+00> : vector<2x1xf32>
    %73 = vector.multi_reduction <add>, %72, %cst_30 [1] : vector<2x16x1xf32> to vector<2x1xf32>
    %74 = vector.broadcast %72 : vector<2x16x1xf32> to vector<2x16x16xf32>
    %75 = arith.mulf %61, %74 : vector<2x16x16xf32>
    %cst_31 = arith.constant dense<0.000000e+00> : vector<2x16xf32>
    %76 = vector.multi_reduction <add>, %75, %cst_31 [1] : vector<2x16x16xf32> to vector<2x16xf32>
    %77 = vector.broadcast %73 : vector<2x1xf32> to vector<2x16xf32>
    %78 = arith.divf %76, %77 : vector<2x16xf32>
    %c2 = arith.constant 2 : index
    %c0_32 = arith.constant 0 : index
    %c0_33 = arith.constant 0 : index
    %79 = vector.load %arg0[%c2, %c0_32, %c0_33] : memref<3x32x160xf32, #tpu.memory_space<vmem>>, vector<1x32x160xf32>
    %80 = vector.shape_cast %79 : vector<1x32x160xf32> to vector<32x160xf32>
    %c2_34 = arith.constant 2 : index
    %c0_35 = arith.constant 0 : index
    %c0_36 = arith.constant 0 : index
    %81 = vector.load %arg1[%c2_34, %c0_35, %c0_36] : memref<3x160x16xf32, #tpu.memory_space<vmem>>, vector<1x160x16xf32>
    %82 = vector.shape_cast %81 : vector<1x160x16xf32> to vector<160x16xf32>
    %c2_37 = arith.constant 2 : index
    %c0_38 = arith.constant 0 : index
    %c0_39 = arith.constant 0 : index
    %83 = vector.load %arg2[%c2_37, %c0_38, %c0_39] : memref<3x19x16xf32, #tpu.memory_space<vmem>>, vector<1x19x16xf32>
    %84 = vector.shape_cast %83 : vector<1x19x16xf32> to vector<19x16xf32>
    %85 = vector.extract_strided_slice %84 {offsets = [0, 0], sizes = [1, 16], strides = [1, 1]} : vector<19x16xf32> to vector<1x16xf32>
    %86 = vector.extract_strided_slice %84 {offsets = [1, 0], sizes = [16, 4], strides = [1, 1]} : vector<19x16xf32> to vector<16x4xf32>
    %87 = vector.extract_strided_slice %84 {offsets = [17, 0], sizes = [1, 4], strides = [1, 1]} : vector<19x16xf32> to vector<1x4xf32>
    %88 = vector.extract_strided_slice %84 {offsets = [18, 0], sizes = [1, 4], strides = [1, 1]} : vector<19x16xf32> to vector<1x4xf32>
    %cst_40 = arith.constant dense<0.000000e+00> : vector<32x16xf32>
    %89 = tpu.matmul %80, %82, %cst_40 {dimension_numbers = #tpu.dot_dimension_numbers<[1], [0], [0], [1], [0, 0, 1, 1], [], []>} : vector<32x160xf32>, vector<160x16xf32>, vector<32x16xf32> -> vector<32x16xf32>
    %90 = vector.broadcast %85 : vector<1x16xf32> to vector<32x16xf32>
    %91 = arith.addf %89, %90 : vector<32x16xf32>
    %cst_41 = arith.constant 0.000000e+00 : f32
    %92 = vector.broadcast %cst_41 : f32 to vector<32x16xf32>
    %93 = arith.maximumf %91, %92 : vector<32x16xf32>
    %cst_42 = arith.constant dense<0.000000e+00> : vector<32x4xf32>
    %94 = tpu.matmul %93, %86, %cst_42 {dimension_numbers = #tpu.dot_dimension_numbers<[1], [0], [0], [1], [0, 0, 1, 1], [], []>} : vector<32x16xf32>, vector<16x4xf32>, vector<32x4xf32> -> vector<32x4xf32>
    %95 = vector.broadcast %87 : vector<1x4xf32> to vector<32x4xf32>
    %96 = arith.addf %94, %95 : vector<32x4xf32>
    %cst_43 = arith.constant 0.000000e+00 : f32
    %97 = vector.broadcast %cst_43 : f32 to vector<32x4xf32>
    %98 = arith.maximumf %96, %97 : vector<32x4xf32>
    %99 = vector.broadcast %88 : vector<1x4xf32> to vector<32x4xf32>
    %100 = arith.mulf %98, %99 : vector<32x4xf32>
    %cst_44 = arith.constant dense<0.000000e+00> : vector<32xf32>
    %101 = vector.multi_reduction <add>, %100, %cst_44 [1] : vector<32x4xf32> to vector<32xf32>
    %102 = vector.shape_cast %101 : vector<32xf32> to vector<32x1xf32>
    %103 = vector.shape_cast %93 : vector<32x16xf32> to vector<2x16x16xf32>
    %104 = vector.shape_cast %102 : vector<32x1xf32> to vector<2x16x1xf32>
    %105 = tpu.iota {dimensions = array<i32: 1>} : vector<2x16x1xi32>
    %c12_i32 = arith.constant 12 : i32
    %106 = vector.broadcast %c12_i32 : i32 to vector<2x16x1xi32>
    %107 = arith.cmpi slt, %105, %106 : vector<2x16x1xi32>
    %cst_45 = arith.constant 0xFF800000 : f32
    %108 = vector.broadcast %cst_45 : f32 to vector<2x16x1xf32>
    %109 = arith.select %107, %104, %108 : vector<2x16x1xi1>, vector<2x16x1xf32>
    %cst_46 = arith.constant dense<0xFF800000> : vector<2x1xf32>
    %110 = vector.multi_reduction <maximumf>, %109, %cst_46 [1] : vector<2x16x1xf32> to vector<2x1xf32>
    %111 = vector.shape_cast %110 : vector<2x1xf32> to vector<2x1x1xf32>
    %112 = vector.broadcast %111 : vector<2x1x1xf32> to vector<2x16x1xf32>
    %113 = arith.subf %109, %112 : vector<2x16x1xf32>
    %114 = math.exp %113 : vector<2x16x1xf32>
    %cst_47 = arith.constant dense<0.000000e+00> : vector<2x1xf32>
    %115 = vector.multi_reduction <add>, %114, %cst_47 [1] : vector<2x16x1xf32> to vector<2x1xf32>
    %116 = vector.broadcast %114 : vector<2x16x1xf32> to vector<2x16x16xf32>
    %117 = arith.mulf %103, %116 : vector<2x16x16xf32>
    %cst_48 = arith.constant dense<0.000000e+00> : vector<2x16xf32>
    %118 = vector.multi_reduction <add>, %117, %cst_48 [1] : vector<2x16x16xf32> to vector<2x16xf32>
    %119 = vector.broadcast %115 : vector<2x1xf32> to vector<2x16xf32>
    %120 = arith.divf %118, %119 : vector<2x16xf32>
    %121 = tpu.concatenate %36, %78, %120 in 1 : vector<2x16xf32>, vector<2x16xf32>, vector<2x16xf32> -> vector<2x48xf32>
    %c0_49 = arith.constant 0 : index
    %c0_50 = arith.constant 0 : index
    %122 = vector.load %arg3[%c0_49, %c0_50] : memref<2x48xf32, #tpu.memory_space<vmem>>, vector<2x48xf32>
    tpu.vector_store %arg3[%c0_49, %c0_50], %121 {strides = array<i32>} : memref<2x48xf32, #tpu.memory_space<vmem>>, vector<2x48xf32>,
    return
  }
}

</mosaic_0001>

<bundles_post_ra>
// kernel: text_attn_cnn.1
= control target key start
LH: loop header
LB: loop body
LE: loop exit
PB: predicated region body
PF: predicated region fallthrough
CT: control target
= control target key end

     0   :  { %v1282_v2 = vmov 0.0   ;;  %s1814_s0 = inlined_call_operand.vmem [shape: f32[3,32,160], index: 0, kind: input, shape index: {}]   ;;  %s1815_s1 = inlined_call_operand.vmem [shape: f32[3,160,16], index: 1, kind: input, shape index: {}]   ;;  %s1816_s2 = inlined_call_operand.vmem [shape: f32[3,19,16], index: 2, kind: input, shape index: {}]   ;;  %s1817_s3 = inlined_call_operand.hbm [shape: f32[2,48], index: 3, kind: output, shape index: {}]  }
   0x1   :  { %v38_v0 = vld [vmem:[%s1815_s1 + $0x78] sm:$0xff]  ;;  %63 = vmatprep.subr.mxu0 %v1282_v2  ;;  %406 = vmatprep.subr.mxu1 %v1282_v2  ;;  %v37_v3 = vld [vmem:[%s1815_s1 + $0x70] sm:$0xff]  ;;  %v36_v5 = vld [vmem:[%s1815_s1 + $0x68] sm:$0xff] }
   0x2   :  { %v1117_v1 = vld [vmem:[%s1815_s1 + $0x118] sm:$0xff]  ;;  %v1116_v4 = vld [vmem:[%s1815_s1 + $0x110] sm:$0xff]  ;;  %64 = vmatpush1.msra.mxu0 %v38_v0  ;;  %v1115_v6 = vld [vmem:[%s1815_s1 + $0x108] sm:$0xff] }
   0x3   :  { %407 = vmatpush1.msra.mxu1 %v1117_v1  ;;  %65 = vmatprep.subr.mxu0 %v1282_v2  ;;  %v35_v7 = vld [vmem:[%s1815_s1 + $0x60] sm:$0xff]  ;;  %v34_v9 = vld [vmem:[%s1815_s1 + $0x58] sm:$0xff]  ;;  %v33_v11 = vld [vmem:[%s1815_s1 + $0x50] sm:$0xff] }
   0x4   :  { %408 = vmatprep.subr.mxu1 %v1282_v2  ;;  %66 = vmatpush1.msra.mxu0 %v37_v3  ;;  %v1114_v8 = vld [vmem:[%s1815_s1 + $0x100] sm:$0xff]  ;;  %v1113_v10 = vld [vmem:[%s1815_s1 + $0xf8] sm:$0xff]  ;;  %v1112_v12 = vld [vmem:[%s1815_s1 + $0xf0] sm:$0xff] }
   0x5   :  { %409 = vmatpush1.msra.mxu1 %v1116_v4  ;;  %67 = vmatprep.subr.mxu0 %v1282_v2  ;;  %v32_v13 = vld [vmem:[%s1815_s1 + $0x48] sm:$0xff]  ;;  %v31_v15 = vld [vmem:[%s1815_s1 + $0x40] sm:$0xff]  ;;  %v30_v17 = vld [vmem:[%s1815_s1 + $0x38] sm:$0xff] }
   0x6   :  { %410 = vmatprep.subr.mxu1 %v1282_v2  ;;  %68 = vmatpush1.msra.mxu0 %v36_v5  ;;  %v1111_v14 = vld [vmem:[%s1815_s1 + $0xe8] sm:$0xff]  ;;  %v1110_v16 = vld [vmem:[%s1815_s1 + $0xe0] sm:$0xff]  ;;  %v1109_v18 = vld [vmem:[%s1815_s1 + $0xd8] sm:$0xff] }
   0x7   :  { %411 = vmatpush1.msra.mxu1 %v1115_v6  ;;  %69 = vmatprep.subr.mxu0 %v1282_v2  ;;  %v29_v19 = vld [vmem:[%s1815_s1 + $0x30] sm:$0xff]  ;;  %v28_v21 = vld [vmem:[%s1815_s1 + $0x28] sm:$0xff]  ;;  %v27_v23 = vld [vmem:[%s1815_s1 + $0x20] sm:$0xff] }
   0x8   :  { %412 = vmatprep.subr.mxu1 %v1282_v2  ;;  %70 = vmatpush1.msra.mxu0 %v35_v7  ;;  %v1108_v20 = vld [vmem:[%s1815_s1 + $0xd0] sm:$0xff]  ;;  %v1107_v22 = vld [vmem:[%s1815_s1 + $0xc8] sm:$0xff]  ;;  %v1106_v24 = vld [vmem:[%s1815_s1 + $0xc0] sm:$0xff] }
   0x9   :  { %413 = vmatpush1.msra.mxu1 %v1114_v8  ;;  %71 = vmatprep.subr.mxu0 %v1282_v2  ;;  %v26_v25 = vld [vmem:[%s1815_s1 + $0x18] sm:$0xff]  ;;  %v25_v27 = vld [vmem:[%s1815_s1 + $0x10] sm:$0xff]  ;;  %v24_v29 = vld [vmem:[%s1815_s1 + $0x8] sm:$0xff] }
   0xa   :  { %414 = vmatprep.subr.mxu1 %v1282_v2  ;;  %72 = vmatpush1.msra.mxu0 %v34_v9  ;;  %v1105_v26 = vld [vmem:[%s1815_s1 + $0xb8] sm:$0xff]  ;;  %v1104_v28 = vld [vmem:[%s1815_s1 + $0xb0] sm:$0xff]  ;;  %v1103_v30 = vld [vmem:[%s1815_s1 + $0xa8] sm:$0xff] }
   0xb   :  { %415 = vmatpush1.msra.mxu1 %v1113_v10  ;;  %73 = vmatprep.subr.mxu0 %v1282_v2 }
   0xc   :  { %416 = vmatprep.subr.mxu1 %v1282_v2  ;;  %74 = vmatpush1.msra.mxu0 %v33_v11 }
   0xd   :  { %417 = vmatpush1.msra.mxu1 %v1112_v12  ;;  %75 = vmatprep.subr.mxu0 %v1282_v2 }
   0xe   :  { %418 = vmatprep.subr.mxu1 %v1282_v2  ;;  %76 = vmatpush1.msra.mxu0 %v32_v13 }
   0xf   :  { %419 = vmatpush1.msra.mxu1 %v1111_v14  ;;  %77 = vmatprep.subr.mxu0 %v1282_v2 }
  0x10   :  { %420 = vmatprep.subr.mxu1 %v1282_v2  ;;  %78 = vmatpush1.msra.mxu0 %v31_v15 }
  0x11   :  { %421 = vmatpush1.msra.mxu1 %v1110_v16  ;;  %79 = vmatprep.subr.mxu0 %v1282_v2 }
  0x12   :  { %422 = vmatprep.subr.mxu1 %v1282_v2  ;;  %80 = vmatpush1.msra.mxu0 %v30_v17 }
  0x13   :  { %423 = vmatpush1.msra.mxu1 %v1109_v18  ;;  %81 = vmatprep.subr.mxu0 %v1282_v2 }
  0x14   :  { %424 = vmatprep.subr.mxu1 %v1282_v2  ;;  %82 = vmatpush1.msra.mxu0 %v29_v19 }
  0x15   :  { %425 = vmatpush1.msra.mxu1 %v1108_v20  ;;  %83 = vmatprep.subr.mxu0 %v1282_v2 }
  0x16   :  { %426 = vmatprep.subr.mxu1 %v1282_v2  ;;  %84 = vmatpush1.msra.mxu0 %v28_v21 }
  0x17   :  { %427 = vmatpush1.msra.mxu1 %v1107_v22  ;;  %85 = vmatprep.subr.mxu0 %v1282_v2 }
  0x18   :  { %428 = vmatprep.subr.mxu1 %v1282_v2  ;;  %86 = vmatpush1.msra.mxu0 %v27_v23 }
  0x19   :  { %429 = vmatpush1.msra.mxu1 %v1106_v24  ;;  %87 = vmatprep.subr.mxu0 %v1282_v2 }
  0x1a   :  { %430 = vmatprep.subr.mxu1 %v1282_v2  ;;  %88 = vmatpush1.msra.mxu0 %v26_v25 }
  0x1b   :  { %431 = vmatpush1.msra.mxu1 %v1105_v26  ;;  %89 = vmatprep.subr.mxu0 %v1282_v2 }
  0x1c   :  { %432 = vmatprep.subr.mxu1 %v1282_v2  ;;  %90 = vmatpush1.msra.mxu0 %v25_v27 }
  0x1d   :  { %433 = vmatpush1.msra.mxu1 %v1104_v28 }
  0x1e   :  { %8 = vsyncpa [#allocation3], 0  ;;  %91 = vmatprep.subr.mxu0 %v1282_v2  ;;  %434 = vmatprep.subr.mxu1 %v1282_v2  ;;  %v23_v31 = vld [vmem:[%s1815_s1] sm:$0xff]  ;;  %v42_v33 = vld [vmem:[%s1815_s1 + $0x98] sm:$0xff]  ;;  %vm50_vm0 = vcmask 261120   ;;  %vm159_vm1 = vcmask 1046528  }
  0x1f   :  { %v1102_v32 = vld [vmem:[%s1815_s1 + $0xa0] sm:$0xff]  ;;  %92 = vmatpush1.msra.mxu0 %v24_v29  ;;  %435 = vmatpush1.msra.mxu1 %v1103_v30  ;;  %v1121_v34 = vld [vmem:[%s1815_s1 + $0x138] sm:$0xff]  ;;  %v41_v35 = vld [vmem:[%s1815_s1 + $0x90] sm:$0xff]  ;;  %vm167_vm2 = vcmask 130048   ;;  %vm277_vm3 = vcmask 31744   ;;  %vm1053_vm6 = vcmask 1041409  }
  0x20   :  { %93 = vmatprep.subr.mxu0 %v1282_v2  ;;  %436 = vmatprep.subr.mxu1 %v1282_v2  ;;  %v1120_v36 = vld [vmem:[%s1815_s1 + $0x130] sm:$0xff]  ;;  %v40_v37 = vld [vmem:[%s1815_s1 + $0x88] sm:$0xff]  ;;  %v39_v39 = vld [vmem:[%s1815_s1 + $0x80] sm:$0xff]  ;;  %s1284_s7 = smov 32   ;;  %s1285_s8 = smov [#allocation2]   ;;  %vm1070_vm7 = vcmask 386048  }
  0x21   :  { %94 = vmatpush1.msra.mxu0 %v23_v31  ;;  %437 = vmatpush1.msra.mxu1 %v1102_v32  ;;  %v1119_v38 = vld [vmem:[%s1815_s1 + $0x128] sm:$0xff]  ;;  %v1118_v41 = vld [vmem:[%s1815_s1 + $0x120] sm:$0xff]  ;;  %v18_v45 = vld [vmem:[%s1814_s0 + $0x18] sm:$0xff]  ;;  %s1078_s9 = sshll.u32 %s1285_s8, 4  ;;  %s1079_s9 = int_to_ptr.vmem [resolvable:$true] %s1078_s9 }
  0x22   :  { %119 = vmatprep.subr.mxu0 %v1282_v2  ;;  %462 = vmatprep.subr.mxu1 %v1282_v2  ;;  %v16_v40 = vld [vmem:[%s1814_s0 + $0x8] sm:$0xff]  ;;  %v15_v43 = vld [vmem:[%s1814_s0] sm:$0xff]  ;;  %v1156_v46 = vld [vmem:[%s1815_s1 + $0x1b8] sm:$0xff]  ;;  %p1265_p1 = scmp.lt.s32.totalorder %s1079_s9, %s1079_s9 }
  0x23   :  { %120 = vmatpush2.msra.mxu0 %v42_v33  ;;  %463 = vmatpush2.msra.mxu1 %v1121_v34  ;;  %v1095_v42 = vld [vmem:[%s1814_s0 + $0x48] sm:$0xff]  ;;  %v1094_v44 = vld [vmem:[%s1814_s0 + $0x40] sm:$0xff]  ;;  %v1097_v47 = vld [vmem:[%s1814_s0 + $0x58] sm:$0xff] }
  0x24   :  { %121 = vmatprep.subr.mxu0 %v1282_v2  ;;  %464 = vmatprep.subr.mxu1 %v1282_v2  ;;  %v1155_v48 = vld [vmem:[%s1815_s1 + $0x1b0] sm:$0xff]  ;;  %v20_v50 = vld [vmem:[%s1814_s0 + $0x28] sm:$0xff]  ;;  %v1153_v53 = vld [vmem:[%s1815_s1 + $0x1a0] sm:$0xff] }
  0x25   :  { %122 = vmatpush2.msra.mxu0 %v41_v35  ;;  %465 = vmatpush2.msra.mxu1 %v1120_v36  ;;  %v17_v49 = vld [vmem:[%s1814_s0 + $0x10] sm:$0xff]  ;;  %v1154_v51 = vld [vmem:[%s1815_s1 + $0x1a8] sm:$0xff]  ;;  %v19_v54 = vld [vmem:[%s1814_s0 + $0x20] sm:$0xff] }
  0x26   :  { %123 = vmatprep.subr.mxu0 %v1282_v2  ;;  %466 = vmatprep.subr.mxu1 %v1282_v2  ;;  %v1096_v52 = vld [vmem:[%s1814_s0 + $0x50] sm:$0xff]  ;;  %v22_v55 = vld [vmem:[%s1814_s0 + $0x38] sm:$0xff]  ;;  %v1099_v57 = vld [vmem:[%s1814_s0 + $0x68] sm:$0xff] }
  0x27   :  { %124 = vmatpush2.msra.mxu0 %v40_v37  ;;  %467 = vmatpush2.msra.mxu1 %v1119_v38  ;;  %v1152_v56 = vld [vmem:[%s1815_s1 + $0x198] sm:$0xff]  ;;  %v1098_v58 = vld [vmem:[%s1814_s0 + $0x60] sm:$0xff]  ;;  %v1151_v59 = vld [vmem:[%s1815_s1 + $0x190] sm:$0xff]  ;;  %v46_v37 = vlaneseq }
  0x28   :  { %125 = vmatprep.subr.mxu0 %v1282_v2  ;;  %468 = vmatprep.subr.mxu1 %v1282_v2  ;;  %v21_v60 = vld [vmem:[%s1814_s0 + $0x30] sm:$0xff]  ;;  %v1101_v61 = vld [vmem:[%s1814_s0 + $0x78] sm:$0xff]  ;;  %v1150_v62 = vld [vmem:[%s1815_s1 + $0x188] sm:$0xff] }
  0x29   :  { %126 = vmatpush2.msra.mxu0 %v39_v39  ;;  %1086 = vmatprep.mubr.msk.f32.mxu0 %vm50_vm0, %v16_v40  ;;  %v1100_v63 = vld [vmem:[%s1814_s0 + $0x70] sm:$0xff]  ;;  %v1149_v0 = vld [vmem:[%s1815_s1 + $0x180] sm:$0xff]  ;;  %v1134_v1 = vld [vmem:[%s1814_s0 + $0x88] sm:$0xff]  ;;  %v1658_v38 = vshrl.u32 %v46_v37, 7 }
  0x2a   :  { %469 = vmatpush2.msra.mxu1 %v1118_v41  ;;  %1125 = vmatprep.mubr.msk.f32.mxu1 %vm50_vm0, %v1095_v42  ;;  %v1148_v3 = vld [vmem:[%s1815_s1 + $0x178] sm:$0xff]  ;;  %v1147_v4 = vld [vmem:[%s1815_s1 + $0x170] sm:$0xff]  ;;  %v1146_v5 = vld [vmem:[%s1815_s1 + $0x168] sm:$0xff] }
  0x2b   :  { %128 = vmatmul.mubr.f32.vlgmr.msra.gmra.mxu0 %v15_v43  ;;  %471 = vmatmul.mubr.f32.vlgmr.msra.gmra.mxu1 %v1094_v44  ;;  %v1145_v6 = vld [vmem:[%s1815_s1 + $0x160] sm:$0xff]  ;;  %v1144_v7 = vld [vmem:[%s1815_s1 + $0x158] sm:$0xff]  ;;  %v1143_v8 = vld [vmem:[%s1815_s1 + $0x150] sm:$0xff]  ;;  %v48_v39 = vsub.s32 0, %v1658_v38 }
  0x2c   :  { %755 = vmatprep.subr.mxu1 %v1282_v2  ;;  %1087 = vmatprep.mubr.msk.f32.mxu0 %vm50_vm0, %v18_v45  ;;  %v1142_v9 = vld [vmem:[%s1815_s1 + $0x148] sm:$0xff]  ;;  %v1141_v10 = vld [vmem:[%s1815_s1 + $0x140] sm:$0xff]  ;;  %v1160_v11 = vld [vmem:[%s1815_s1 + $0x1d8] sm:$0xff] }
  0x2d   :  { %756 = vmatpush1.msra.mxu1 %v1156_v46  ;;  %1126 = vmatprep.mubr.msk.f32.mxu1 %vm50_vm0, %v1097_v47  ;;  %v1159_v12 = vld [vmem:[%s1815_s1 + $0x1d0] sm:$0xff]  ;;  %v1158_v13 = vld [vmem:[%s1815_s1 + $0x1c8] sm:$0xff]  ;;  %v1157_v14 = vld [vmem:[%s1815_s1 + $0x1c0] sm:$0xff]  ;;  %s1260_s1 = scalar_lea.vmem %s1079_s9, 32 }
  0x2e   :  { %757 = vmatprep.subr.mxu1 %v1282_v2  ;;  %v1133_v15 = vld [vmem:[%s1814_s0 + $0x80] sm:$0xff]  ;;  %v1136_v16 = vld [vmem:[%s1814_s0 + $0x98] sm:$0xff]  ;;  %v1135_v17 = vld [vmem:[%s1814_s0 + $0x90] sm:$0xff]  ;;  %p1261_p0 = scmp.ne.s32.totalorder %s1079_s9, %s1260_s1  ;;  %p1266_p2 = scmp.lt.s32.totalorder %s1260_s1, %s1260_s1 }
  0x2f   :  { %758 = vmatpush1.msra.mxu1 %v1155_v48  ;;  %133 = vmatmul.mubr.f32.gmra.mxu0 %v17_v49  ;;  %v1138_v18 = vld [vmem:[%s1814_s0 + $0xa8] sm:$0xff]  ;;  %v1140_v19 = vld [vmem:[%s1814_s0 + $0xb8] sm:$0xff]  ;;  %v1139_v20 = vld [vmem:[%s1814_s0 + $0xb0] sm:$0xff] }
  0x30   :  { %759 = vmatprep.subr.mxu1 %v1282_v2  ;;  %1088 = vmatprep.mubr.msk.f32.mxu0 %vm50_vm0, %v20_v50  ;;  %v44_v21 = vld [vmem:[%s1816_s2 + $0x8] sm:$0xff]  ;;  %v1636_v22 = vld [vmem:[%s1816_s2 + $0x10] sm:$0x7]  ;;  %v43_v25 = vld [vmem:[%s1816_s2] sm:$0xff]  ;;  %p1267_p3 = por %p1266_p2, %p1265_p1 }
  0x31   :  { %760 = vmatpush1.msra.mxu1 %v1154_v51  ;;  %v161_v23 = vrot.slane %v44_v21, 1  ;;  %v163_v24 = vrot.slane %v1636_v22, 1  ;;  %v160_v27 = vrot.slane %v43_v25, 1  ;;  %v1123_v29 = vld [vmem:[%s1816_s2 + $0x20] sm:$0xff]  ;;  %v1650_v30 = vld [vmem:[%s1816_s2 + $0x28] sm:$0x7]  ;;  %v49_v40 = vrot.slane %v43_v25, %v48_v39 }
  0x32   :  { %761 = vmatprep.subr.mxu1 %v1282_v2  ;;  %476 = vmatmul.mubr.f32.gmra.mxu1 %v1096_v52  ;;  %v503_v31 = vrot.slane %v1123_v29, 1  ;;  %v505_v32 = vrot.slane %v1650_v30, 1  ;;  %v1122_v33 = vld [vmem:[%s1816_s2 + $0x18] sm:$0xff]  ;;  %v1670_v48 = vld [vmem:[%s1816_s2 + $0x40] sm:$0x7]  ;;  %p1268_p4 = pnand %p1267_p3, %p1261_p0 }
  0x33   :  { %762 = vmatpush1.msra.mxu1 %v1153_v53  ;;  %138 = vmatmul.mubr.f32.gmra.mxu0 %v19_v54  ;;  %v164_v26 = vsel %vm159_vm1, %v161_v23, %v163_v24  ;;  %v162_v28 = vsel %vm159_vm1, %v160_v27, %v161_v23  ;;  %v502_v35 = vrot.slane %v1122_v33, 1  ;;  %v1162_v47 = vld [vmem:[%s1816_s2 + $0x38] sm:$0xff]  ;;  %v854_v53 = vrot.slane %v1670_v48, 1 }
  0x34   :  { %763 = vmatprep.subr.mxu1 %v1282_v2  ;;  %1089 = vmatprep.mubr.msk.f32.mxu0 %vm50_vm0, %v22_v55  ;;  %v506_v34 = vsel %vm159_vm1, %v503_v31, %v505_v32  ;;  %v852_v52 = vrot.slane %v1162_v47, 1 }
  0x35   :  { %764 = vmatpush1.msra.mxu1 %v1152_v56  ;;  %1127 = vmatprep.mubr.msk.f32.mxu1 %vm50_vm0, %v1099_v57  ;;  %v504_v36 = vsel %vm159_vm1, %v502_v35, %v503_v31  ;;  %v393_v56 = vrot.slane %v1122_v33, %v48_v39 }
  0x36   :  { %765 = vmatprep.subr.mxu1 %v1282_v2  ;;  %481 = vmatmul.mubr.f32.gmra.mxu1 %v1098_v58 }
  0x37   :  { %766 = vmatpush1.msra.mxu1 %v1151_v59  ;;  %143 = vmatmul.mubr.f32.gmra.mxu0 %v21_v60 }
  0x38   :  { %767 = vmatprep.subr.mxu1 %v1282_v2  ;;  %1128 = vmatprep.mubr.msk.f32.mxu1 %vm50_vm0, %v1101_v61  ;;  %v855_v61 = vsel %vm159_vm1, %v852_v52, %v854_v53 }
  0x39   :  { %768 = vmatpush1.msra.mxu1 %v1150_v62  ;;  %1190 = vmatprep.subr.mxu0 %v164_v26 }
  0x3a   :  { %769 = vmatprep.subr.mxu1 %v1282_v2  ;;  %486 = vmatmul.mubr.f32.gmra.mxu1 %v1100_v63 }
  0x3b   :  { %770 = vmatpush1.msra.mxu1 %v1149_v0  ;;  %1164 = vmatprep.mubr.msk.f32.mxu1 %vm50_vm0, %v1134_v1 }
  0x3c   :  { %771 = vmatprep.subr.mxu1 %v1282_v2  ;;  %1191 = vmatpush3.msra.mxu0 %v164_v26 }
  0x3d   :  { %772 = vmatpush1.msra.mxu1 %v1148_v3  ;;  %1192 = vmatprep.subr.mxu0 %v162_v28 }
  0x3e   :  { %773 = vmatprep.subr.mxu1 %v1282_v2  ;;  %1193 = vmatpush3.msra.mxu0 %v162_v28 }
  0x3f   :  { %774 = vmatpush1.msra.mxu1 %v1147_v4  ;;  %1200 = vmatprep.subr.mxu0 %v506_v34 }
  0x40   :  { %775 = vmatprep.subr.mxu1 %v1282_v2 }
  0x41   :  { %776 = vmatpush1.msra.mxu1 %v1146_v5 }
  0x42   :  { %777 = vmatprep.subr.mxu1 %v1282_v2 }
  0x43   :  { %778 = vmatpush1.msra.mxu1 %v1145_v6 }
  0x44   :  { %779 = vmatprep.subr.mxu1 %v1282_v2 }
  0x45   :  { %780 = vmatpush1.msra.mxu1 %v1144_v7 }
  0x46   :  { %781 = vmatprep.subr.mxu1 %v1282_v2 }
  0x47   :  { %782 = vmatpush1.msra.mxu1 %v1143_v8 }
  0x48   :  { %783 = vmatprep.subr.mxu1 %v1282_v2 }
  0x49   :  { %784 = vmatpush1.msra.mxu1 %v1142_v9 }
  0x4a   :  { %785 = vmatprep.subr.mxu1 %v1282_v2 }
  0x4b   :  { %786 = vmatpush1.msra.mxu1 %v1141_v10  ;;  %v1161_v10 = vld [vmem:[%s1816_s2 + $0x30] sm:$0xff]  ;;  %s1283_s2 = smov 16  }
  0x4c   :  { %811 = vmatprep.subr.mxu1 %v1282_v2 }
  0x4d   :  { %812 = vmatpush2.msra.mxu1 %v1160_v11 }
  0x4e   :  { %813 = vmatprep.subr.mxu1 %v1282_v2 }
  0x4f   :  { %814 = vmatpush2.msra.mxu1 %v1159_v12  ;;  %v851_v12 = vrot.slane %v1161_v10, 1 }
  0x50   :  { %815 = vmatprep.subr.mxu1 %v1282_v2 }
  0x51   :  { %816 = vmatpush2.msra.mxu1 %v1158_v13 }
  0x52   :  { %817 = vmatprep.subr.mxu1 %v1282_v2  ;;  %v1137_v2 = vld [vmem:[%s1814_s0 + $0xa0] sm:$0xff] }
  0x53   :  { %818 = vmatpush2.msra.mxu1 %v1157_v14 }
  0x54   :  { %820 = vmatmul.mubr.f32.vlgmr.msra.gmra.mxu1 %v1133_v15 }
  0x55   :  { %1165 = vmatprep.mubr.msk.f32.mxu1 %vm50_vm0, %v1136_v16 }
  0x58   :  { %825 = vmatmul.mubr.f32.gmra.mxu1 %v1135_v17  ;;  %v853_v17 = vsel %vm159_vm1, %v851_v12, %v852_v52 }
  0x59   :  { %1166 = vmatprep.mubr.msk.f32.mxu1 %vm50_vm0, %v1138_v18 }
  0x5c   :  { %830 = vmatmul.mubr.f32.gmra.mxu1 %v1137_v2  ;;  %v742_v2 = vrot.slane %v1161_v10, %v48_v39 }
  0x5d   :  { %1167 = vmatprep.mubr.msk.f32.mxu1 %vm50_vm0, %v1140_v19 }
  0x60   :  { %835 = vmatmul.mubr.f32.gmra.mxu1 %v1139_v20 }
  0xeb   :  { %v129_v41 = vpop.f32.mrf.mxu0  ;;  %v472_v42 = vpop.f32.mrf.mxu1 }
  0xec   :  { %v1661_v43 = vadd.f32 %v129_v41, %v49_v40  ;;  %v1686_v0 = vadd.f32 %v472_v42, %v393_v56 }
  0xed   :  { %v131_v44 = vpop.f32.mrf.mxu0  ;;  %v474_v45 = vpop.f32.mrf.mxu1 }
  0xee   :  { %v148_v46 = vmax.f32 %v1661_v43, 0.0  ;;  %v491_v11 = vmax.f32 %v1686_v0, 0.0  ;;  %v271_v44 = vsub.s32 2, %v1658_v38 }
  0xef   :  { %v134_v49 = vpop.f32.mrf.mxu0 }
  0xf0   :  { %v1672_v50 = vadd.f32 %v134_v49, %v49_v40  ;;  %1194 = vmatprep.mubr.msk.f32.mxu0 %vm167_vm2, %v148_v46 }
  0xf1   :  { %v136_v51 = vpop.f32.mrf.mxu0 }
  0xf2   :  { %v149_v54 = vmax.f32 %v1672_v50, 0.0  ;;  %v477_v55 = vpop.f32.mrf.mxu1  ;;  %v613_v51 = vrot.slane %v1650_v30, %v271_v44 }
  0xf3   :  { %v139_v57 = vpop.f32.mrf.mxu0  ;;  %v1690_v4 = vadd.f32 %v477_v55, %v393_v56 }
  0xf4   :  { %v1679_v58 = vadd.f32 %v139_v57, %v49_v40  ;;  %1195 = vmatmul.mubr.msk.f32.vlgmr.msra.gmra.mxu0 %vm167_vm2, %v149_v54  ;;  %v479_v59 = vpop.f32.mrf.mxu1 }
  0xf5   :  { %v141_v60 = vpop.f32.mrf.mxu0  ;;  %1201 = vmatpush3.msra.mxu0 %v506_v34  ;;  %v492_v13 = vmax.f32 %v1690_v4, 0.0 }
  0xf6   :  { %v150_v62 = vmax.f32 %v1679_v58, 0.0  ;;  %v482_v63 = vpop.f32.mrf.mxu1  ;;  %1202 = vmatprep.subr.mxu0 %v504_v36 }
  0xf7   :  { %v144_v1 = vpop.f32.mrf.mxu0  ;;  %1203 = vmatpush3.msra.mxu0 %v504_v36  ;;  %v1695_v6 = vadd.f32 %v482_v63, %v393_v56 }
  0xf8   :  { %v1688_v3 = vadd.f32 %v144_v1, %v49_v40  ;;  %1197 = vmatprep.mubr.msk.f32.mxu0 %vm167_vm2, %v150_v62  ;;  %v484_v5 = vpop.f32.mrf.mxu1  ;;  %1210 = vmatprep.subr.mxu0 %v855_v61  ;;  %v154_v40 = vsub.s32 1, %v1658_v38 }
  0xf9   :  { %v146_v7 = vpop.f32.mrf.mxu0  ;;  %v493_v16 = vmax.f32 %v1695_v6, 0.0 }
  0xfa   :  { %v151_v8 = vmax.f32 %v1688_v3, 0.0  ;;  %v487_v9 = vpop.f32.mrf.mxu1  ;;  %v498_v42 = vrot.slane %v1650_v30, %v154_v40 }
  0xfb   :  { %v1706_v14 = vadd.f32 %v487_v9, %v393_v56 }
  0xfc   :  { %1198 = vmatmul.mubr.msk.f32.gmra.mxu0 %vm167_vm2, %v151_v8  ;;  %v489_v15 = vpop.f32.mrf.mxu1 }
  0xfd   :  { %1204 = vmatprep.mubr.msk.f32.mxu0 %vm167_vm2, %v491_v11  ;;  %v494_v18 = vmax.f32 %v1706_v14, 0.0 }
 0x100   :  { %1205 = vmatmul.mubr.msk.f32.vlgmr.msra.gmra.mxu0 %vm167_vm2, %v492_v13 }
 0x101   :  { %1207 = vmatprep.mubr.msk.f32.mxu0 %vm167_vm2, %v493_v16  ;;  %1211 = vmatpush3.msra.mxu0 %v855_v61 }
 0x102   :  { %1212 = vmatprep.subr.mxu0 %v853_v17 }
 0x103   :  { %1213 = vmatpush3.msra.mxu0 %v853_v17 }
 0x104   :  { %1208 = vmatmul.mubr.msk.f32.gmra.mxu0 %vm167_vm2, %v494_v18 }
 0x114   :  { %v821_v19 = vpop.f32.mrf.mxu1 }
 0x115   :  { %v1723_v20 = vadd.f32 %v821_v19, %v742_v2  ;;  %v155_v19 = vrot.slane %v1636_v22, %v154_v40 }
 0x116   :  { %v823_v21 = vpop.f32.mrf.mxu1 }
 0x117   :  { %v840_v23 = vmax.f32 %v1723_v20, 0.0 }
 0x118   :  { %v826_v24 = vpop.f32.mrf.mxu1 }
 0x119   :  { %v1726_v25 = vadd.f32 %v826_v24, %v742_v2  ;;  %1214 = vmatprep.mubr.msk.f32.mxu0 %vm167_vm2, %v840_v23 }
 0x11a   :  { %v828_v26 = vpop.f32.mrf.mxu1 }
 0x11b   :  { %v841_v27 = vmax.f32 %v1726_v25, 0.0  ;;  %v962_v26 = vrot.slane %v1670_v48, %v271_v44 }
 0x11c   :  { %v831_v28 = vpop.f32.mrf.mxu1 }
 0x11d   :  { %v1732_v29 = vadd.f32 %v831_v28, %v742_v2  ;;  %1215 = vmatmul.mubr.msk.f32.vlgmr.msra.gmra.mxu0 %vm167_vm2, %v841_v27 }
 0x11e   :  { %v833_v31 = vpop.f32.mrf.mxu1 }
 0x11f   :  { %v842_v32 = vmax.f32 %v1732_v29, 0.0 }
 0x120   :  { %v836_v33 = vpop.f32.mrf.mxu1 }
 0x121   :  { %v1738_v34 = vadd.f32 %v836_v33, %v742_v2  ;;  %1217 = vmatprep.mubr.msk.f32.mxu0 %vm167_vm2, %v842_v32  ;;  %v847_v2 = vrot.slane %v1670_v48, %v154_v40 }
 0x122   :  { %v838_v35 = vpop.f32.mrf.mxu1 }
 0x123   :  { %v843_v36 = vmax.f32 %v1738_v34, 0.0 }
 0x125   :  { %1218 = vmatmul.mubr.msk.f32.gmra.mxu0 %vm167_vm2, %v843_v36 }
 0x1b4   :  { %v1196_v37 = vpop.f32.mrf.mxu0 }
 0x1b6   :  { %v246_v39 = vpop.f32.mrf.mxu0 }
 0x1b7   :  { %v247_v28 = vadd.f32 %v246_v39, %v155_v19 }
 0x1bc   :  { %v1199_v41 = vpop.f32.mrf.mxu0 }
 0x1be   :  { %v256_v45 = vpop.f32.mrf.mxu0 }
 0x1c0   :  { %v1206_v47 = vpop.f32.mrf.mxu0 }
 0x1c1   :  { %v593_v49 = vadd.f32 %v1206_v47, %v498_v42 }
 0x1c2   :  { %v587_v52 = vpop.f32.mrf.mxu0 }
 0x1c3   :  { %v607_v53 = vmax.f32 %v593_v49, 0.0  ;;  %v588_v55 = vadd.f32 %v587_v52, %v498_v42  ;;  %v265_v49 = vmax.f32 %v247_v28, 0.0  ;;  %v257_v52 = vadd.f32 %v256_v45, %v155_v19 }
 0x1c4   :  { %v1209_v56 = vpop.f32.mrf.mxu0 }
 0x1c5   :  { %v606_v57 = vmax.f32 %v588_v55, 0.0  ;;  %v603_v59 = vadd.f32 %v1209_v56, %v498_v42  ;;  %v615_v60 = vmul.f32 %v613_v51, %v607_v53  ;;  %v267_v48 = vmax.f32 %v257_v52, 0.0 }
 0x1c6   :  { %v597_v61 = vpop.f32.mrf.mxu0 }
 0x1c7   :  { %v609_v63 = vmax.f32 %v603_v59, 0.0  ;;  %v598_v1 = vadd.f32 %v597_v61, %v498_v42  ;;  %v621_v5 = vsel %vm277_vm3, %v615_v60, 0.0  ;;  %v614_v7 = vmul.f32 %v613_v51, %v606_v57 }
 0x1c8   :  { %622 = vadd.xlane.f32.xlu0 %v621_v5  ;;  %v252_v57 = vadd.f32 %v1196_v37, %v155_v19 }
 0x1c9   :  { %v608_v9 = vmax.f32 %v598_v1, 0.0  ;;  %v618_v10 = vsel %vm277_vm3, %v614_v7, 0.0  ;;  %v617_v12 = vmul.f32 %v613_v51, %v609_v63 }
 0x1ca   :  { %619 = vadd.xlane.f32.xlu1 %v618_v10  ;;  %v266_v7 = vmax.f32 %v252_v57, 0.0 }
 0x1cb   :  { %v627_v30 = vsel %vm277_vm3, %v617_v12, 0.0  ;;  %v616_v15 = vmul.f32 %v613_v51, %v608_v9  ;;  %v272_v51 = vrot.slane %v1636_v22, %v271_v44  ;;  %v262_v22 = vadd.f32 %v1199_v41, %v155_v19 }
 0x1cc   :  { %628 = vadd.xlane.f32.xlu0 %v627_v30  ;;  %v632_v19 = vadd.s32 8, %v1658_v38 }
 0x1cd   :  { %v624_v17 = vsel %vm277_vm3, %v616_v15, 0.0  ;;  %v273_v60 = vmul.f32 %v272_v51, %v265_v49  ;;  %v275_v10 = vmul.f32 %v272_v51, %v267_v48  ;;  %v268_v37 = vmax.f32 %v262_v22, 0.0 }
 0x1ce   :  { %625 = vadd.xlane.f32.xlu1 %v624_v17  ;;  %v274_v15 = vmul.f32 %v272_v51, %v266_v7  ;;  %vm634_vm4 = vcmp.lt.s32.totalorder %v632_v19, 14  ;;  %vm980_vm5 = vcmp.lt.s32.totalorder %v632_v19, 12 }
 0x1cf   :  { %v278_v45 = vsel %vm277_vm3, %v273_v60, 0.0  ;;  %v284_v30 = vsel %vm277_vm3, %v275_v10, 0.0 }
 0x1d0   :  { %v281_v17 = vsel %vm277_vm3, %v274_v15, 0.0 }
 0x1dd   :  { %v1216_v21 = vpop.f32.mrf.mxu0 }
 0x1de   :  { %v942_v24 = vadd.f32 %v1216_v21, %v847_v2 }
 0x1df   :  { %v936_v31 = vpop.f32.mrf.mxu0 }
 0x1e0   :  { %v956_v33 = vmax.f32 %v942_v24, 0.0  ;;  %v937_v35 = vadd.f32 %v936_v31, %v847_v2 }
 0x1e2   :  { %v955_v42 = vmax.f32 %v937_v35, 0.0  ;;  %v964_v47 = vmul.f32 %v962_v26, %v956_v33 }
 0x1e4   :  { %v970_v53 = vsel %vm277_vm3, %v964_v47, 0.0  ;;  %v963_v55 = vmul.f32 %v962_v26, %v955_v42 }
 0x1e5   :  { %971 = vadd.xlane.f32.xlu0 %v970_v53  ;;  %v1219_v56 = vpop.f32.mrf.mxu0 }
 0x1e6   :  { %v952_v40 = vadd.f32 %v1219_v56, %v847_v2  ;;  %v967_v63 = vsel %vm277_vm3, %v963_v55, 0.0 }
 0x1e7   :  { %v946_v59 = vpop.f32.mrf.mxu0 }
 0x1e8   :  { %v958_v39 = vmax.f32 %v952_v40, 0.0  ;;  %v947_v61 = vadd.f32 %v946_v59, %v847_v2  ;;  %v276_v2 = vmul.f32 %v272_v51, %v268_v37 }
 0x1e9   :  { %968 = vadd.xlane.f32.xlu0 %v967_v63 }
 0x1ea   :  { %v957_v1 = vmax.f32 %v947_v61, 0.0  ;;  %v966_v5 = vmul.f32 %v962_v26, %v958_v39  ;;  %v287_v41 = vsel %vm277_vm3, %v276_v2, 0.0 }
 0x1ec   :  { %v976_v44 = vsel %vm277_vm3, %v966_v5, 0.0  ;;  %v965_v9 = vmul.f32 %v962_v26, %v957_v1 }
 0x1ed   :  { %977 = vadd.xlane.f32.xlu1 %v976_v44  ;;  %279 = vadd.xlane.f32.xlu0 %v278_v45 }
 0x1ee   :  { %v973_v12 = vsel %vm277_vm3, %v965_v9, 0.0 }
 0x1f1   :  { %974 = vadd.xlane.f32.xlu1 %v973_v12  ;;  %285 = vadd.xlane.f32.xlu0 %v284_v30 }
 0x1f5   :  { %282 = vadd.xlane.f32.xlu1 %v281_v17 }
 0x1f9   :  { %288 = vadd.xlane.f32.xlu1 %v287_v41 }
 0x251   :  { %v623_v21 = vpop.xlane.xlu0 %622 }
 0x252   :  { %v636_v24 = vsel %vm634_vm4, %v623_v21, -inf }
 0x253   :  { %v620_v26 = vpop.xlane.xlu1 %619 }
 0x254   :  { %v639_v28 = vmax.f32 %v620_v26, %v636_v24 }
 0x255   :  { %v629_v31 = vpop.xlane.xlu0 %628 }
 0x256   :  { %v640_v33 = vrot.slane %v639_v28, 4  ;;  %v638_v35 = vsel %vm634_vm4, %v629_v31, -inf }
 0x257   :  { %v626_v42 = vpop.xlane.xlu1 %625 }
 0x258   :  { %v641_v47 = vmax.f32 %v639_v28, %v640_v33  ;;  %v646_v49 = vmax.f32 %v626_v42, %v638_v35 }
 0x25a   :  { %v642_v52 = vrot.slane %v641_v47, 2  ;;  %v647_v53 = vrot.slane %v646_v49, 4 }
 0x25c   :  { %v643_v51 = vmax.f32 %v641_v47, %v642_v52  ;;  %v648_v55 = vmax.f32 %v646_v49, %v647_v53 }
 0x25e   :  { %v644_v56 = vrot.slane %v643_v51, 1  ;;  %v649_v40 = vrot.slane %v648_v55, 2 }
 0x260   :  { %v645_v57 = vmax.f32 %v643_v51, %v644_v56  ;;  %v650_v59 = vmax.f32 %v648_v55, %v649_v40 }
 0x262   :  { %v653_v38 = vsub.f32 %v620_v26, %v645_v57  ;;  %v654_v60 = vsub.f32 %v636_v24, %v645_v57  ;;  %v651_v48 = vrot.slane %v650_v59, 1 }
 0x264   :  { %v657_v39 = vmul.f32 1.442695, %v653_v38  ;;  %v659_v61 = vmul.f32 1.442695, %v654_v60  ;;  %v652_v63 = vmax.f32 %v650_v59, %v651_v48 }
 0x266   :  { %1224 = vpow2.f32 %v657_v39  ;;  %v655_v1 = vsub.f32 %v626_v42, %v652_v63  ;;  %v656_v5 = vsub.f32 %v638_v35, %v652_v63 }
 0x267   :  { %1226 = vpow2.f32 %v659_v61 }
 0x268   :  { %v661_v7 = vmul.f32 1.442695, %v655_v1  ;;  %v663_v22 = vmul.f32 1.442695, %v656_v5 }
 0x26a   :  { %1228 = vpow2.f32 %v661_v7 }
 0x26b   :  { %1230 = vpow2.f32 %v663_v22 }
 0x26e   :  { %v972_v44 = vpop.xlane.xlu0 %971 }
 0x26f   :  { %v982_v45 = vsel %vm980_vm5, %v972_v44, -inf }
 0x272   :  { %v969_v9 = vpop.xlane.xlu0 %968 }
 0x273   :  { %v1225_v10 = vpop.eup %1224  ;;  %v985_v37 = vmax.f32 %v969_v9, %v982_v45 }
 0x274   :  { %v1227_v12 = vpop.eup %1226  ;;  %v679_v30 = vmul.f32 %v1225_v10, %v491_v11 }
 0x275   :  { %v665_v15 = vadd.f32 %v1227_v12, %v1225_v10  ;;  %v986_v17 = vrot.slane %v985_v37, 4  ;;  %v680_v2 = vmul.f32 %v1227_v12, %v492_v13 }
 0x276   :  { %v978_v41 = vpop.xlane.xlu1 %977  ;;  %v683_v33 = vsel %vm167_vm2, %v679_v30, 0.0 }
 0x277   :  { %v1229_v21 = vpop.eup %1228  ;;  %v666_v24 = vrot.slane %v665_v15, 4  ;;  %v987_v26 = vmax.f32 %v985_v37, %v986_v17  ;;  %v684_v35 = vsel %vm167_vm2, %v680_v2, 0.0  ;;  %v984_v4 = vsel %vm980_vm5, %v978_v41, -inf }
 0x278   :  { %v1231_v28 = vpop.eup %1230  ;;  %v681_v31 = vmul.f32 %v1229_v21, %v493_v16  ;;  %v685_v16 = vadd.f32 %v684_v35, %v683_v33 }
 0x279   :  { %v667_v42 = vadd.f32 %v666_v24, %v665_v15  ;;  %v672_v0 = vadd.f32 %v1231_v28, %v1229_v21  ;;  %v988_v11 = vrot.slane %v987_v26, 2  ;;  %v682_v47 = vmul.f32 %v1231_v28, %v494_v18 }
 0x27a   :  { %v975_v13 = vpop.xlane.xlu1 %974  ;;  %v692_v49 = vsel %vm167_vm2, %v681_v31, 0.0  ;;  %v686_v48 = vrot.slane %v685_v16, 4 }
 0x27b   :  { %v668_v52 = vrot.slane %v667_v42, 2  ;;  %v673_v53 = vrot.slane %v672_v0, 4  ;;  %v989_v51 = vmax.f32 %v987_v26, %v988_v11  ;;  %v992_v6 = vmax.f32 %v975_v13, %v984_v4 }
 0x27c   :  { %v693_v55 = vsel %vm167_vm2, %v682_v47, 0.0  ;;  %v687_v12 = vadd.f32 %v686_v48, %v685_v16 }
 0x27d   :  { %v669_v56 = vadd.f32 %v668_v52, %v667_v42  ;;  %v674_v40 = vadd.f32 %v673_v53, %v672_v0  ;;  %v990_v57 = vrot.slane %v989_v51, 1  ;;  %v993_v59 = vrot.slane %v992_v6, 4 }
 0x27e   :  { %v694_v38 = vadd.f32 %v693_v55, %v692_v49  ;;  %v688_v41 = vrot.slane %v687_v12, 2 }
 0x27f   :  { %v675_v60 = vrot.slane %v674_v40, 2  ;;  %v991_v14 = vmax.f32 %v989_v51, %v990_v57  ;;  %v994_v18 = vmax.f32 %v992_v6, %v993_v59  ;;  %v670_v19 = vrot.slane %v669_v56, 1 }
 0x280   :  { %v695_v39 = vrot.slane %v694_v38, 4  ;;  %v689_v28 = vadd.f32 %v688_v41, %v687_v12 }
 0x281   :  { %v676_v61 = vadd.f32 %v675_v60, %v674_v40  ;;  %v999_v63 = vsub.f32 %v969_v9, %v991_v14  ;;  %v1000_v1 = vsub.f32 %v982_v45, %v991_v14  ;;  %v995_v5 = vrot.slane %v994_v18, 2 }
 0x282   :  { %v671_v10 = vadd.f32 %v670_v19, %v669_v56  ;;  %v696_v30 = vadd.f32 %v695_v39, %v694_v38  ;;  %v690_v33 = vrot.slane %v689_v28, 1 }
 0x283   :  { %v1003_v7 = vmul.f32 1.442695, %v999_v63  ;;  %v1005_v22 = vmul.f32 1.442695, %v1000_v1  ;;  %v996_v44 = vmax.f32 %v994_v18, %v995_v5  ;;  %v677_v37 = vrot.slane %v676_v61, 1 }
 0x284   :  { %v697_v21 = vrot.slane %v696_v30, 2  ;;  %v691_v49 = vadd.f32 %v690_v33, %v689_v28  ;;  %v283_v28 = vpop.xlane.xlu1 %282 }
 0x285   :  { %1232 = vpow2.f32 %v1003_v7  ;;  %v997_v15 = vrot.slane %v996_v44, 1  ;;  %v678_v17 = vadd.f32 %v677_v37, %v676_v61 }
 0x286   :  { %1234 = vpow2.f32 %v1005_v22  ;;  %v698_v31 = vadd.f32 %v697_v21, %v696_v30 }
 0x287   :  { %v998_v2 = vmax.f32 %v996_v44, %v997_v15  ;;  %1236 = vrcp.f32 %v671_v10 }
 0x288   :  { %1238 = vrcp.f32 %v678_v17  ;;  %v699_v35 = vrot.slane %v698_v31, 1  ;;  %v289_v33 = vpop.xlane.xlu1 %288 }
 0x289   :  { %v1001_v24 = vsub.f32 %v975_v13, %v998_v2  ;;  %v1002_v9 = vsub.f32 %v984_v4, %v998_v2 }
 0x28a   :  { %v700_v52 = vadd.f32 %v699_v35, %v698_v31  ;;  %v280_v31 = vpop.xlane.xlu0 %279 }
 0x28b   :  { %v1007_v45 = vmul.f32 1.442695, %v1001_v24  ;;  %v1009_v26 = vmul.f32 1.442695, %v1002_v9 }
 0x28d   :  { %1240 = vpow2.f32 %v1007_v45 }
 0x28e   :  { %1242 = vpow2.f32 %v1009_v26  ;;  %v286_v35 = vpop.xlane.xlu0 %285 }
 0x292   :  { %v1233_v42 = vpop.eup %1232 }
 0x293   :  { %v1235_v0 = vpop.eup %1234  ;;  %v1025_v4 = vmul.f32 %v1233_v42, %v840_v23 }
 0x294   :  { %v1237_v11 = vpop.eup %1236  ;;  %v1011_v47 = vadd.f32 %v1235_v0, %v1233_v42  ;;  %v1026_v16 = vmul.f32 %v1235_v0, %v841_v27  ;;  %v297_v42 = vmax.f32 %v286_v35, %v289_v33  ;;  %v290_v0 = vmax.f32 %v280_v31, %v283_v28 }
 0x295   :  { %v1239_v53 = vpop.eup %1238  ;;  %v702_v6 = vmul.f32 %v1237_v11, %v691_v49  ;;  %v1029_v60 = vsel %vm167_vm2, %v1025_v4, 0.0 }
 0x296   :  { %v1012_v51 = vrot.slane %v1011_v47, 4  ;;  %v704_v13 = vmul.f32 %v1239_v53, %v700_v52  ;;  %v1030_v14 = vsel %vm167_vm2, %v1026_v16, 0.0  ;;  %v298_v11 = vrot.slane %v297_v42, 4 }
 0x297   :  { %v1031_v19 = vadd.f32 %v1030_v14, %v1029_v60 }
 0x298   :  { %v1013_v55 = vadd.f32 %v1012_v51, %v1011_v47  ;;  %v1058_v56 = vsel %vm1053_vm6, %v704_v13, %v702_v6  ;;  %v291_v47 = vrot.slane %v290_v0, 4  ;;  %v299_v49 = vmax.f32 %v297_v42, %v298_v11 }
 0x299   :  { %1059 = vrot.lane.b32.xlu0 %v1058_v56, %s1283_s2 }
 0x29a   :  { %v1241_v40 = vpop.eup %1240  ;;  %v1014_v57 = vrot.slane %v1013_v55, 2  ;;  %v292_v52 = vmax.f32 %v290_v0, %v291_v47  ;;  %v300_v53 = vrot.slane %v299_v49, 2 }
 0x29b   :  { %v1243_v59 = vpop.eup %1242  ;;  %v1027_v38 = vmul.f32 %v1241_v40, %v842_v32  ;;  %v1032_v32 = vrot.slane %v1031_v19, 4 }
 0x29c   :  { %v1015_v20 = vadd.f32 %v1014_v57, %v1013_v55  ;;  %v1018_v23 = vadd.f32 %v1243_v59, %v1241_v40  ;;  %v1028_v25 = vmul.f32 %v1243_v59, %v843_v36  ;;  %v293_v51 = vrot.slane %v292_v52, 2 }
 0x29d   :  { %v1038_v27 = vsel %vm167_vm2, %v1027_v38, 0.0  ;;  %v1033_v44 = vadd.f32 %v1032_v32, %v1031_v19  ;;  %v301_v6 = vmax.f32 %v299_v49, %v300_v53 }
 0x29e   :  { %v1019_v18 = vrot.slane %v1018_v23, 4  ;;  %v1039_v48 = vsel %vm167_vm2, %v1028_v25, 0.0  ;;  %v1016_v63 = vrot.slane %v1015_v20, 1  ;;  %v294_v13 = vmax.f32 %v292_v52, %v293_v51 }
 0x29f   :  { %v1040_v39 = vadd.f32 %v1039_v48, %v1038_v27  ;;  %v1034_v34 = vrot.slane %v1033_v44, 2  ;;  %v302_v4 = vrot.slane %v301_v6, 1 }
 0x2a0   :  { %v1020_v61 = vadd.f32 %v1019_v18, %v1018_v23  ;;  %v1017_v7 = vadd.f32 %v1016_v63, %v1015_v20  ;;  %v295_v16 = vrot.slane %v294_v13, 1 }
 0x2a1   :  { %v1041_v1 = vrot.slane %v1040_v39, 4  ;;  %v1035_v12 = vadd.f32 %v1034_v34, %v1033_v44  ;;  %v303_v55 = vmax.f32 %v301_v6, %v302_v4 }
 0x2a2   :  { %v1021_v29 = vrot.slane %v1020_v61, 2  ;;  %1244 = vrcp.f32 %v1017_v7  ;;  %v296_v56 = vmax.f32 %v294_v13, %v295_v16 }
 0x2a3   :  { %v1042_v10 = vadd.f32 %v1041_v1, %v1040_v39  ;;  %v1036_v15 = vrot.slane %v1035_v12, 1  ;;  %v306_v40 = vsub.f32 %v286_v35, %v303_v55  ;;  %v307_v57 = vsub.f32 %v289_v33, %v303_v55 }
 0x2a4   :  { %v1022_v5 = vadd.f32 %v1021_v29, %v1020_v61  ;;  %v304_v59 = vsub.f32 %v280_v31, %v296_v56  ;;  %v305_v38 = vsub.f32 %v283_v28, %v296_v56 }
 0x2a5   :  { %v1043_v36 = vrot.slane %v1042_v10, 2  ;;  %v1037_v41 = vadd.f32 %v1036_v15, %v1035_v12  ;;  %v312_v60 = vmul.f32 1.442695, %v306_v40  ;;  %v314_v14 = vmul.f32 1.442695, %v307_v57 }
 0x2a6   :  { %v1023_v22 = vrot.slane %v1022_v5, 1  ;;  %v308_v20 = vmul.f32 1.442695, %v304_v59  ;;  %v310_v23 = vmul.f32 1.442695, %v305_v38 }
 0x2a7   :  { %v1044_v30 = vadd.f32 %v1043_v36, %v1042_v10 }
 0x2a8   :  { %v1024_v37 = vadd.f32 %v1023_v22, %v1022_v5 }
 0x2a9   :  { %v1045_v17 = vrot.slane %v1044_v30, 1 }
 0x2aa   :  { %1246 = vrcp.f32 %v1024_v37 }
 0x2ab   :  { %v1046_v21 = vadd.f32 %v1045_v17, %v1044_v30  ;;  %1248 = vpow2.f32 %v312_v60 }
 0x2ac   :  { %1250 = vpow2.f32 %v314_v14 }
 0x2ad   :  { %1252 = vpow2.f32 %v308_v20 }
 0x2ae   :  { %1254 = vpow2.f32 %v310_v23 }
 0x2af   :  { %v1245_v2 = vpop.eup %1244 }
 0x2b0   :  { %v1048_v9 = vmul.f32 %v1245_v2, %v1037_v41 }
 0x2b7   :  { %v1247_v24 = vpop.eup %1246 }
 0x2b8   :  { %v1050_v45 = vmul.f32 %v1247_v24, %v1046_v21  ;;  %v1249_v25 = vpop.eup %1248 }
 0x2b9   :  { %v1251_v27 = vpop.eup %1250  ;;  %v332_v5 = vmul.f32 %v1249_v25, %v150_v62 }
 0x2ba   :  { %v1064_v26 = vsel %vm1053_vm6, %v1050_v45, %v1048_v9  ;;  %v1253_v18 = vpop.eup %1252  ;;  %v323_v48 = vadd.f32 %v1251_v27, %v1249_v25  ;;  %v333_v1 = vmul.f32 %v1251_v27, %v151_v8 }
 0x2bb   :  { %1065 = vrot.lane.b32.xlu1 %v1064_v26, %s1284_s7  ;;  %v1255_v19 = vpop.eup %1254  ;;  %v330_v44 = vmul.f32 %v1253_v18, %v148_v46  ;;  %v343_v37 = vsel %vm167_vm2, %v332_v5, 0.0 }
 0x2bc   :  { %v316_v39 = vadd.f32 %v1255_v19, %v1253_v18  ;;  %v324_v61 = vrot.slane %v323_v48, 4  ;;  %v331_v22 = vmul.f32 %v1255_v19, %v149_v54  ;;  %v344_v34 = vsel %vm167_vm2, %v333_v1, 0.0 }
 0x2bd   :  { %v334_v12 = vsel %vm167_vm2, %v330_v44, 0.0  ;;  %v345_v58 = vadd.f32 %v344_v34, %v343_v37 }
 0x2be   :  { %v317_v63 = vrot.slane %v316_v39, 4  ;;  %v325_v29 = vadd.f32 %v324_v61, %v323_v48  ;;  %v335_v3 = vsel %vm167_vm2, %v331_v22, 0.0 }
 0x2bf   :  { %v336_v30 = vadd.f32 %v335_v3, %v334_v12  ;;  %v346_v50 = vrot.slane %v345_v58, 4 }
 0x2c0   :  { %v318_v32 = vadd.f32 %v317_v63, %v316_v39  ;;  %v326_v7 = vrot.slane %v325_v29, 2 }
 0x2c1   :  { %v337_v17 = vrot.slane %v336_v30, 4  ;;  %v347_v46 = vadd.f32 %v346_v50, %v345_v58 }
 0x2c2   :  { %v319_v10 = vrot.slane %v318_v32, 2  ;;  %v327_v36 = vadd.f32 %v326_v7, %v325_v29 }
 0x2c3   :  { %v338_v2 = vadd.f32 %v337_v17, %v336_v30  ;;  %v348_v41 = vrot.slane %v347_v46, 2 }
 0x2c4   :  { %v320_v8 = vadd.f32 %v319_v10, %v318_v32  ;;  %v328_v62 = vrot.slane %v327_v36, 1 }
 0x2c5   :  { %v339_v21 = vrot.slane %v338_v2, 2  ;;  %v349_v24 = vadd.f32 %v348_v41, %v347_v46 }
 0x2c6   :  { %v321_v15 = vrot.slane %v320_v8, 1  ;;  %v329_v54 = vadd.f32 %v328_v62, %v327_v36 }
 0x2c7   :  { %v340_v9 = vadd.f32 %v339_v21, %v338_v2  ;;  %v350_v45 = vrot.slane %v349_v24, 1 }
 0x2c8   :  { %v322_v43 = vadd.f32 %v321_v15, %v320_v8  ;;  %1256 = vrcp.f32 %v329_v54 }
 0x2c9   :  { %v341_v26 = vrot.slane %v340_v9, 1  ;;  %v351_v31 = vadd.f32 %v350_v45, %v349_v24 }
 0x2ca   :  { %1258 = vrcp.f32 %v322_v43 }
 0x2cb   :  { %v342_v35 = vadd.f32 %v341_v26, %v340_v9 }
 0x2d5   :  { %v1257_v28 = vpop.eup %1256 }
 0x2d6   :  { %v355_v42 = vmul.f32 %v1257_v28, %v351_v31 }
 0x2d7   :  { %v1259_v33 = vpop.eup %1258 }
 0x2d8   :  { %v353_v0 = vmul.f32 %v1259_v33, %v342_v35 }
 0x2da   :  { %v1054_v47 = vsel %vm1053_vm6, %v355_v42, %v353_v0 }
 0x30b   :  { %v1060_v11 = vpop.permute.xlu0 %1059 }
 0x30c   :  { %v1068_v49 = vsel %vm167_vm2, %v1054_v47, %v1060_v11 }
 0x32d   :  { %v1066_v52 = vpop.permute.xlu1 %1065 }
 0x32e   :  { %v1069_v53 = vsel %vm50_vm0, %v1068_v49, %v1066_v52 }
 0x32f   :  { %1071 = vst.msk [vmem:[#allocation2] sm:$0x3] %vm1070_vm7, %v1069_v53 }
 0x330   :  { %1271 = shalt.err (!%p1268_p4)
}
 0x331   :  { %1081 = dma.vmem_to_hbm [thread:$0]  %s1079_s9, 32, %s1817_s3, [#allocation3]  }
 0x332   :  { %1280 = dma.done.wait [#allocation3], 32  }
 0x333   :  { %1281 = vsyncadd [#allocation3], 4294967264 }
 0x334   :  { %1085 = vsyncpa [#allocation3], 1 }

</bundles_post_ra>
